<compile_context>
chip_gen: v7x
topology: tpu7x:2x2x1
jax: 0.10.0
libtpu: 0.0.40
codegen_flags: <defaults>
</compile_context>

<pallas_src>
import functools

import jax
import jax.numpy as jnp
from jax.experimental import pallas as pl
from jax.experimental.pallas import tpu as pltpu


def _round_up(x: int, m: int) -> int:
    return ((x + m - 1) // m) * m


def _choose_tb(batch: int, hw: int, target_rows: int = 256) -> int:
    """Boards per grid step.

    Aim for ~256 projection LHS rows (fills v6e/v7x's 256-wide MXU; >=128 already
    fills v5e's 128x128), but keep >=2 grid steps when batch >= 2 so v7x's two
    TensorCores both get work.  Prefer a TB that divides the batch (no padding).
    """
    max_tb = max(1, min(batch, target_rows // max(hw, 1)))
    min_steps = 2 if batch >= 2 else 1
    feasible = [tb for tb in range(1, max_tb + 1) if -(-batch // tb) >= min_steps]
    if not feasible:
        return 1
    divisors = [tb for tb in feasible if batch % tb == 0]
    return max(divisors) if divisors else max(feasible)


def _spatial_attn_kernel(x_ref, w_ref, b_ref, o_ref, *, tb, hw, c, c8p):
    x = x_ref[...]                                            # (TB, HW, C) f32
    x_bf = x.reshape(tb * hw, c).astype(jnp.bfloat16)

    # Fused q|k|v projection: one (TB*HW, C) @ (C, 2*C8p + C) MXU matmul
    # (bf16 operands, f32 accumulation) + one bias add.  The attention scale is
    # pre-folded into the q columns of w/b on the host.
    proj = jnp.dot(x_bf, w_ref[...], preferred_element_type=jnp.float32) + b_ref[...]

    q = proj[:, :c8p].reshape(tb, hw, c8p)                    # scale already applied
    k = proj[:, c8p:2 * c8p].reshape(tb, hw, c8p)
    v = proj[:, 2 * c8p:].reshape(tb, hw, c)

    # Per-board attention scores; padded head-dim columns are exactly zero so the
    # contraction over them is exact.
    s = jnp.einsum("bqd,bkd->bqk",
                   q.astype(jnp.bfloat16), k.astype(jnp.bfloat16),
                   preferred_element_type=jnp.float32)        # (TB, HW, HW)

    # Numerically-stable softmax, f32 epilogue.  EUP reciprocal (~1e-3 rel err) is
    # covered by the bf16-matmul tolerance; switch to exact division if needed.
    s = s - jnp.max(s, axis=-1, keepdims=True)
    p = jnp.exp(s)
    p = p * pl.reciprocal(jnp.sum(p, axis=-1, keepdims=True), approx=True)

    out = jnp.einsum("bqk,bkc->bqc",
                     p.astype(jnp.bfloat16), v.astype(jnp.bfloat16),
                     preferred_element_type=jnp.float32)      # (TB, HW, C)

    o_ref[...] = (x + out).astype(o_ref.dtype)                # residual add


def _fuse_params(params, C, C8, C8p, scale):
    """Concatenate the three 1x1-conv projections into one (C, 2*C8p + C) bf16
    matmul weight + (1, F) f32 bias.  q/k head dims are zero-padded to C8p lanes
    and the attention scale is folded into the q columns (f32, pre-cast)."""
    F = 2 * C8p + C
    w = jnp.zeros((C, F), jnp.float32)
    b = jnp.zeros((1, F), jnp.float32)
    w = w.at[:, :C8].set(params["wq"].T.astype(jnp.float32) * scale)
    b = b.at[0, :C8].set(params["bq"].astype(jnp.float32) * scale)
    w = w.at[:, C8p:C8p + C8].set(params["wk"].T.astype(jnp.float32))
    b = b.at[0, C8p:C8p + C8].set(params["bk"].astype(jnp.float32))
    w = w.at[:, 2 * C8p:].set(params["wv"].T.astype(jnp.float32))
    b = b.at[0, 2 * C8p:].set(params["bv"].astype(jnp.float32))
    return w.astype(jnp.bfloat16), b


def spatial_attention_bhwc(x_bhwc, params):
    """Fused SpatialAttention on the (B, HW, C) layout (no NCHW transposes)."""
    B, HW, C = x_bhwc.shape
    C8 = params["wq"].shape[0]
    C8p = _round_up(C8, 128)                  # lane-dense (zero-padded) head dim
    F = 2 * C8p + C
    scale = float(C8) ** -0.5

    w_fused, b_fused = _fuse_params(params, C, C8, C8p, scale)

    tb = _choose_tb(B, HW)
    Bp = _round_up(B, tb)
    x_in = x_bhwc.astype(jnp.float32)
    if Bp != B:
        # Zero-padded boards produce a uniform softmax (no NaNs) and are sliced off.
        x_in = jnp.pad(x_in, ((0, Bp - B), (0, 0), (0, 0)))

    kernel = functools.partial(_spatial_attn_kernel, tb=tb, hw=HW, c=C, c8p=C8p)
    out = pl.pallas_call(
        kernel,
        out_shape=jax.ShapeDtypeStruct((Bp, HW, C), jnp.float32),
        grid=(Bp // tb,),
        in_specs=[
            pl.BlockSpec((tb, HW, C), lambda i: (i, 0, 0)),   # x (TB boards / step)
            pl.BlockSpec((C, F), lambda i: (0, 0)),           # fused q|k|v weight
            pl.BlockSpec((1, F), lambda i: (0, 0)),           # fused bias
        ],
        out_specs=pl.BlockSpec((tb, HW, C), lambda i: (i, 0, 0)),
        compiler_params=pltpu.CompilerParams(
            dimension_semantics=("parallel",),                # megacore split on v7x
        ),
    )(x_in, w_fused, b_fused)
    return out[:B]


def spatial_attention_forward(x_nchw, params):
    """NCHW interface matching the PyTorch module: (B, C, H, W) f32 -> (B, C, H, W) f32."""
    B, C, H, W = x_nchw.shape
    HW = H * W
    x3d = jnp.transpose(x_nchw, (0, 2, 3, 1)).reshape(B, HW, C)
    out3d = spatial_attention_bhwc(x3d, params)
    return jnp.transpose(out3d.reshape(B, H, W, C), (0, 3, 1, 2))


def _reference(x, params):
    """Pure-JAX f32 reference matching the PyTorch forward."""
    B, C, H, W = x.shape
    HW = H * W

    def conv1x1(w, b):
        return jnp.einsum("oc,bchw->bohw", w, x) + b.reshape(1, -1, 1, 1)

    q = conv1x1(params["wq"], params["bq"]).reshape(B, -1, HW).transpose(0, 2, 1)
    k = conv1x1(params["wk"], params["bk"]).reshape(B, -1, HW)
    v = conv1x1(params["wv"], params["bv"]).reshape(B, -1, HW).transpose(0, 2, 1)
    scale = float(C // 8) ** -0.5
    attn = jax.nn.softmax(jnp.einsum("bqd,bdk->bqk", q, k) * scale, axis=-1)
    out = jnp.einsum("bqk,bkc->bqc", attn, v)
    out = out.transpose(0, 2, 1).reshape(B, C, H, W)
    return x + out


def _init_params(key, channels):
    """Deterministic synthetic params; same shapes as the squeezed nn.Conv2d(.., 1) weights."""
    C = channels
    C8 = C // 8
    ks = jax.random.split(key, 6)
    return {
        "wq": 0.05 * jax.random.normal(ks[0], (C8, C), jnp.float32),   # (Cout, Cin)
        "bq": 0.02 * jax.random.normal(ks[1], (C8,), jnp.float32),
        "wk": 0.05 * jax.random.normal(ks[2], (C8, C), jnp.float32),
        "bk": 0.02 * jax.random.normal(ks[3], (C8,), jnp.float32),
        "wv": 0.05 * jax.random.normal(ks[4], (C, C), jnp.float32),
        "bv": 0.02 * jax.random.normal(ks[5], (C,), jnp.float32),
    }


if __name__ == "__main__":
    key = jax.random.PRNGKey(0)
    kx, kp = jax.random.split(key)

    # Chess board: 8x8 squares; channels chosen as a lane-dense multiple of 128.
    B, C, H, W = 4, 128, 8, 8
    x = jax.random.normal(kx, (B, C, H, W), jnp.float32)
    params = _init_params(kp, C)

    out = jax.block_until_ready(spatial_attention_forward(x, params))
    ref = jax.block_until_ready(_reference(x, params))

    assert out.shape == (B, C, H, W)
    # Tolerance reflects bf16 MXU operands (f32 accumulation) + EUP reciprocal.
    max_err = float(jnp.max(jnp.abs(out - ref)))
    assert jnp.allclose(out, ref, atol=2e-2, rtol=2e-2), f"mismatch, max abs err {max_err}"

    print("KERNEL_OK")
</pallas_src>

<mosaic_0001>
module attributes {stable_mosaic.version = 11 : i64} {
  func.func @_spatial_attn_kernel(%arg0: i32, %arg1: memref<2x64x128xf32, #tpu.memory_space<vmem>>, %arg2: memref<128x384xbf16, #tpu.memory_space<vmem>>, %arg3: memref<1x384xf32, #tpu.memory_space<vmem>>, %arg4: memref<2x64x128xf32, #tpu.memory_space<vmem>>) attributes {dimension_semantics = [#tpu.dimension_semantics<parallel>], iteration_bounds = array<i64: 2>, scalar_prefetch = 0 : i64, scratch_operands = 0 : i64, tpu.core_type = #tpu.core_type<tc>, window_params = [{transform_indices = @transform_0, window_bounds = array<i64: 2, 64, 128>}, {pipeline_mode = #tpu.pipeline_mode<synchronous>, transform_indices = @transform_1, window_bounds = array<i64: 128, 384>}, {pipeline_mode = #tpu.pipeline_mode<synchronous>, transform_indices = @transform_2, window_bounds = array<i64: 1, 384>}, {transform_indices = @transform_3, window_bounds = array<i64: 2, 64, 128>}]} {
    %c0 = arith.constant 0 : index
    %c0_0 = arith.constant 0 : index
    %c0_1 = arith.constant 0 : index
    %0 = vector.load %arg1[%c0, %c0_0, %c0_1] : memref<2x64x128xf32, #tpu.memory_space<vmem>>, vector<2x64x128xf32>
    %1 = vector.shape_cast %0 : vector<2x64x128xf32> to vector<128x128xf32>
    %2 = arith.truncf %1 : vector<128x128xf32> to vector<128x128xbf16>
    %c0_2 = arith.constant 0 : index
    %c0_3 = arith.constant 0 : index
    %3 = vector.load %arg2[%c0_2, %c0_3] : memref<128x384xbf16, #tpu.memory_space<vmem>>, vector<128x384xbf16>
    %cst = arith.constant dense<0.000000e+00> : vector<128x384xf32>
    %4 = tpu.matmul %2, %3, %cst {dimension_numbers = #tpu.dot_dimension_numbers<[1], [0], [0], [1], [0, 0, 1, 1], [], []>} : vector<128x128xbf16>, vector<128x384xbf16>, vector<128x384xf32> -> vector<128x384xf32>
    %c0_4 = arith.constant 0 : index
    %c0_5 = arith.constant 0 : index
    %5 = vector.load %arg3[%c0_4, %c0_5] : memref<1x384xf32, #tpu.memory_space<vmem>>, vector<1x384xf32>
    %6 = vector.broadcast %5 : vector<1x384xf32> to vector<128x384xf32>
    %7 = arith.addf %4, %6 : vector<128x384xf32>
    %8 = vector.extract_strided_slice %7 {offsets = [0, 0], sizes = [128, 128], strides = [1, 1]} : vector<128x384xf32> to vector<128x128xf32>
    %9 = vector.shape_cast %8 : vector<128x128xf32> to vector<2x64x128xf32>
    %10 = vector.extract_strided_slice %7 {offsets = [0, 128], sizes = [128, 128], strides = [1, 1]} : vector<128x384xf32> to vector<128x128xf32>
    %11 = vector.shape_cast %10 : vector<128x128xf32> to vector<2x64x128xf32>
    %12 = vector.extract_strided_slice %7 {offsets = [0, 256], sizes = [128, 128], strides = [1, 1]} : vector<128x384xf32> to vector<128x128xf32>
    %13 = vector.shape_cast %12 : vector<128x128xf32> to vector<2x64x128xf32>
    %14 = arith.truncf %9 : vector<2x64x128xf32> to vector<2x64x128xbf16>
    %15 = arith.truncf %11 : vector<2x64x128xf32> to vector<2x64x128xbf16>
    "tpu.trace_start"() <{level = 10 : i32, message = "bqd,bkd->bqk"}> : () -> ()
    %cst_6 = arith.constant dense<0.000000e+00> : vector<2x64x64xf32>
    %16 = tpu.matmul %14, %15, %cst_6 {dimension_numbers = #tpu.dot_dimension_numbers<[2], [2], [1], [1], [0, 0, 0, 1, 1, 1], [0], [0]>} : vector<2x64x128xbf16>, vector<2x64x128xbf16>, vector<2x64x64xf32> -> vector<2x64x64xf32>
    "tpu.trace_stop"() : () -> ()
    %cst_7 = arith.constant dense<0xFF800000> : vector<2x64xf32>
    %17 = vector.multi_reduction <maximumf>, %16, %cst_7 [2] : vector<2x64x64xf32> to vector<2x64xf32>
    %18 = vector.shape_cast %17 : vector<2x64xf32> to vector<2x64x1xf32>
    %19 = vector.broadcast %18 : vector<2x64x1xf32> to vector<2x64x64xf32>
    %20 = arith.subf %16, %19 : vector<2x64x64xf32>
    %21 = math.exp %20 : vector<2x64x64xf32>
    %cst_8 = arith.constant dense<0.000000e+00> : vector<2x64xf32>
    %22 = vector.multi_reduction <add>, %21, %cst_8 [2] : vector<2x64x64xf32> to vector<2x64xf32>
    %23 = vector.shape_cast %22 : vector<2x64xf32> to vector<2x64x1xf32>
    %24 = tpu.reciprocal %23 {approx = true} : vector<2x64x1xf32> -> vector<2x64x1xf32>
    %25 = vector.broadcast %24 : vector<2x64x1xf32> to vector<2x64x64xf32>
    %26 = arith.mulf %21, %25 : vector<2x64x64xf32>
    %27 = arith.truncf %26 : vector<2x64x64xf32> to vector<2x64x64xbf16>
    %28 = arith.truncf %13 : vector<2x64x128xf32> to vector<2x64x128xbf16>
    "tpu.trace_start"() <{level = 10 : i32, message = "bqk,bkc->bqc"}> : () -> ()
    %cst_9 = arith.constant dense<0.000000e+00> : vector<2x64x128xf32>
    %29 = tpu.matmul %27, %28, %cst_9 {dimension_numbers = #tpu.dot_dimension_numbers<[2], [1], [1], [2], [0, 0, 0, 1, 1, 2], [0], [0]>} : vector<2x64x64xbf16>, vector<2x64x128xbf16>, vector<2x64x128xf32> -> vector<2x64x128xf32>
    "tpu.trace_stop"() : () -> ()
    %30 = arith.addf %0, %29 : vector<2x64x128xf32>
    %c0_10 = arith.constant 0 : index
    %c0_11 = arith.constant 0 : index
    %c0_12 = arith.constant 0 : index
    %31 = vector.load %arg4[%c0_10, %c0_11, %c0_12] : memref<2x64x128xf32, #tpu.memory_space<vmem>>, vector<2x64x128xf32>
    tpu.vector_store %arg4[%c0_10, %c0_11, %c0_12], %30 {strides = array<i32>} : memref<2x64x128xf32, #tpu.memory_space<vmem>>, vector<2x64x128xf32>,
    return
  }
  func.func @transform_0(%arg0: i32) -> (i32, i32, i32) {
    %c0_i32 = arith.constant 0 : i32
    %c0_i32_0 = arith.constant 0 : i32
    %c0_i32_1 = arith.constant 0 : i32
    return %arg0, %c0_i32, %c0_i32_0 : i32, i32, i32
  }
  func.func @transform_1(%arg0: i32) -> (i32, i32) {
    %c0_i32 = arith.constant 0 : i32
    %c0_i32_0 = arith.constant 0 : i32
    %c0_i32_1 = arith.constant 0 : i32
    return %c0_i32, %c0_i32_0 : i32, i32
  }
  func.func @transform_2(%arg0: i32) -> (i32, i32) {
    %c0_i32 = arith.constant 0 : i32
    %c0_i32_0 = arith.constant 0 : i32
    %c0_i32_1 = arith.constant 0 : i32
    return %c0_i32, %c0_i32_0 : i32, i32
  }
  func.func @transform_3(%arg0: i32) -> (i32, i32, i32) {
    %c0_i32 = arith.constant 0 : i32
    %c0_i32_0 = arith.constant 0 : i32
    %c0_i32_1 = arith.constant 0 : i32
    return %arg0, %c0_i32, %c0_i32_0 : i32, i32, i32
  }
}

</mosaic_0001>

<bundles_post_ra>
// kernel: tpu_custom_call.1
= control target key start
LH: loop header
LB: loop body
LE: loop exit
PB: predicated region body
PF: predicated region fallthrough
CT: control target
= control target key end

     0   :  { %8 = vsyncpa [#allocation3], 0  ;;  %s2316_s0 = inlined_call_operand.hbm [shape: f32[4,64,128], index: 0, kind: input, shape index: {}]   ;;  %s2317_s1 = inlined_call_operand.hbm [shape: bf16[128,384], index: 1, kind: input, shape index: {}]   ;;  %s2318_s2 = inlined_call_operand.vmem [shape: f32[1,384], index: 2, kind: input, shape index: {}]   ;;  %s2319_s3 = inlined_call_operand.hbm [shape: f32[4,64,128], index: 3, kind: output, shape index: {}]  }
   0x1   :  { %10 = vsyncpa [#allocation3 + $0x1], 0 }
   0x2   :  { %11 = vsyncpa [#allocation6], 0 }
   0x3   :  { %12 = vsyncpa [#allocation4], 0 }
   0x4   :  { %14 = vsyncpa [#allocation4 + $0x1], 0  ;;  %s1762_s12 = smov 0   ;;  %s1764_s13 = smov 0  }
   0x5   :  { %s1766_s14 = smov 0   ;;  %s1768_s15 = smov 0  }
   0x6 LB: > { %s1783_s16 = sadd.s32 4294967295, %s1730_s15   ;;  %s1242_s17 = sadd.s32 4294967294, %s1730_s15   ;;  %s1730_s15 = sphi %s1768_s15, %s2339_s15   ;;  %s1726_s14 = sphi %s1766_s14, %s2338_s14   ;;  %s1722_s13 = sphi %s1764_s13, %s2337_s13   ;;  %s1718_s12 = sphi %s1762_s12, %s2336_s12  }
   0x7   : > { %p40_p0 = scmp.ne.s32.totalorder %s1722_s13, %s1718_s12  ;;  %p2320_p1 = scmp.eq.s32.totalorder %s1783_s16, 0 }
   0x8   : > { %p112_p3 = scmp.eq.s32.totalorder %s1242_s17, 1  ;;  %p1243_p5 = scmp.ge.s32.totalorder %s1730_s15, 1 }
   0x9   : > { %p1792_p4 = por %p2320_p1, %p40_p0  ;;  %p119_p7 = scmp.lt.s32.totalorder %s1730_s15, 3 }
   0xa   : > { %p1797_p6 = por %p112_p3, %p40_p0  ;;  %s1732_s21 = smov [#allocation5]  }
   0xb   : > { %s2323_s18 = scalar_select %p1792_p4, 1, 0 }
   0xc   : > { %s2324_s19 = scalar_select %p1797_p6, 1, 0 }
   0xd   : > { %p1802_p8 = pnand %p1243_p5, %p119_p7  ;;  %s131_s22 = sshll.u32 %s1732_s21, 4  ;;  %s1806_s22 = int_to_ptr.vmem [resolvable:$true] %s131_s22 }
   0xe   : > { %s1818_s24 = sadd.s32 1, %s1730_s15   ;;  %s27_s25 = sadd.s32 1, %s1726_s14 }
   0xf   : > { %s2325_s20 = scalar_select %p1802_p8, 1, 0 }
  0x10   : > { %p1448_p9 = pneg %p1802_p8  ;;  %s24_s26 = ssub.s32 %s1730_s15, %s1818_s24 }
  0x11   : > { %s1602_s29 = scalar_lea.hbm %s2317_s1, 3072 }
  0x12   : > { %p1813_p11 = pnand %p1448_p9, %p2320_p1  ;;  %p1603_p12 = scmp.ne.s32.totalorder %s2317_s1, %s1602_s29 }
  0x13   : > { %p1609_p5 = scmp.lt.u32.totalorder %s1602_s29, %s2317_s1 }
  0x14   : > { %p1604_p13 = pneg %p1813_p11 }
  0x16   : > { %p1605_p0 = pnand %p1604_p13, %p1603_p12 }
  0x18   : > { %p1606_p3 = pneg %p1605_p0 }
  0x1a   : > { %p1611_p7 = pnand %p1609_p5, %p1606_p3 }
  0x1c   : > { %1614 = shalt.err (!%p1611_p7)
}
  0x1d   : > { %s1615_s7 = scalar_lea.vmem %s1806_s22, 3072  ;;  %p1623_p2 = scmp.lt.s32.totalorder %s1806_s22, %s1806_s22 }
  0x1e   : > { %p1616_p9 = scmp.ne.s32.totalorder %s1806_s22, %s1615_s7  ;;  %p1624_p6 = scmp.lt.s32.totalorder %s1615_s7, %s1615_s7 }
  0x20   : > { %p1618_p10 = pnand %p1616_p9, %p1604_p13  ;;  %p1625_p4 = por %p1624_p6, %p1623_p2 }
  0x22   : > { %p1619_p1 = pneg %p1618_p10 }
  0x24   : > { %p1626_p8 = pnand %p1625_p4, %p1619_p1 }
  0x26   : > { %1629 = shalt.err (!%p1626_p8)
}
  0x27   : > { %s1733_s8 = smov 192   ;;  %s1734_s9 = smov 12  }
  0x28   : > { %1451 = dma.hbm_to_vmem [thread:$0]  (!%p1813_p11), %s2317_s1, 3072, %s1806_s22, [#allocation6], %s1733_s8, %s1733_s8, %s1734_s9  }
  0x29   : > { %p25_p2 = scmp.eq.s32.totalorder %s24_s26, 0  ;;  %p34_p1 = scmp.ne.s32.totalorder %s1726_s14, %s1722_s13 }
  0x2a   : > { %p35_p4 = scmp.eq.s32.totalorder %s1730_s15, 0  ;;  %p1461_p6 = scmp.lt.s32.totalorder %s1730_s15, 2 }
  0x2b   : > { %s1849_s17 = scalar_select %p25_p2, %s1726_s14, %s27_s25  }
  0x2c   : > { %p36_p8 = por %p35_p4, %p34_p1  ;;  %p2327_p10 = scmp.eq.s32.totalorder %s1783_s16, 1 }
  0x2d   : > { %s148_s27 = sand.u32 1, %s1726_s14   ;;  %s1293_s28 = sshll.u32 %s1730_s15, 11 }
  0x2e   : > { %p1853_p12 = por %p2327_p10, %p34_p1  ;;  %s1246_s29 = sshll.u32 %s148_s27, 7 }
  0x2f   : > { %s1862_s4 = scalar_lea.hbm %s2316_s0, %s1293_s28  ;;  %s152_s22 = scalar_lea.vmem [#allocation2], %s1246_s29 }
  0x30   : > { %s160_s25 = sshll.u32 %s152_s22, 4  ;;  %p1864_p11 = pnand %p1461_p6, %p36_p8  ;;  %s1868_s25 = int_to_ptr.vmem [resolvable:$true] %s160_s25 }
  0x31   : > { %s1870_s5 = scalar_lea.sflag [#allocation3], %s148_s27  ;;  %s1630_s6 = scalar_lea.hbm %s1862_s4, 2048 }
  0x32   : > { %p1631_p13 = scmp.ne.s32.totalorder %s1862_s4, %s1630_s6  ;;  %p1632_p0 = pneg %p1864_p11 }
  0x33   : > { %s1635_s9 = scalar_lea.hbm %s2316_s0, 4096  ;;  %p1636_p7 = scmp.lt.u32.totalorder %s1862_s4, %s2316_s0 }
  0x34   : > { %p1633_p3 = pnand %p1632_p0, %p1631_p13  ;;  %p1637_p9 = scmp.lt.u32.totalorder %s1635_s9, %s1630_s6 }
  0x35   : > { %p1639_p1 = scmp.lt.u32.totalorder %s1630_s6, %s1862_s4 }
  0x36   : > { %p1634_p5 = pneg %p1633_p3  ;;  %p1638_p2 = por %p1637_p9, %p1636_p7 }
  0x38   : > { %p1640_p4 = por %p1639_p1, %p1638_p2 }
  0x3a   : > { %p1641_p6 = pnand %p1640_p4, %p1634_p5 }
  0x3c   : > { %1644 = shalt.err (!%p1641_p6)
}
  0x3d   : > { %s1645_s27 = scalar_lea.vmem %s1868_s25, 2048  ;;  %s1735_s28 = smov [#allocation2]  }
  0x3e   : > { %p1646_p8 = scmp.ne.s32.totalorder %s1868_s25, %s1645_s27  ;;  %s1650_s29 = sshll.u32 %s1735_s28, 4  ;;  %s1651_s29 = int_to_ptr.vmem [resolvable:$false] %s1650_s29 }
  0x3f   : > { %s1652_s23 = scalar_lea.vmem %s1651_s29, 4096  ;;  %p1653_p3 = scmp.lt.s32.totalorder %s1868_s25, %s1651_s29 }
  0x40   : > { %p1648_p10 = pnand %p1646_p8, %p1632_p0  ;;  %p1654_p7 = scmp.lt.s32.totalorder %s1652_s23, %s1645_s27 }
  0x42   : > { %p1649_p13 = pneg %p1648_p10  ;;  %p1655_p9 = por %p1654_p7, %p1653_p3 }
  0x44   : > { %p1656_p2 = pnand %p1655_p9, %p1649_p13 }
  0x46   : > { %1659 = shalt.err (!%p1656_p2)
}
  0x47   : > { %s1736_s30 = smov 128   ;;  %s1737_s22 = smov 8  }
  0x48   : > { %1455 = dma.hbm_to_vmem [thread:$0]  (!%p1864_p11), %s1862_s4, 2048, %s1868_s25, %s1870_s5, %s1736_s30, %s1736_s30, %s1737_s22  }
  0x49   : > { %p2330_p0 = scmp.ne.s32.totalorder %s2325_s20, 0 }
  0x4a   : > { %s1901_s6 = sand.u32 (!%p2330_p0), 1, %s1722_s13   ;;  %p2331_p5 = scmp.ne.s32.totalorder (!%p2330_p0), %s2323_s18, 0 }
  0x4b   : > { %172 = sbr.rel (%p2330_p0) target bundleno = 1177 (0x499), region = 32  ;;  %s1251_s7 = sshll.u32 (!%p2330_p0), %s1901_s6, 7 }
  0x4c   : > { %s175_s8 = scalar_lea.sflag (!%p2330_p0), [#allocation3], %s1901_s6  ;;  %s1907_s9 = scalar_lea.vmem (!%p2330_p0), [#allocation2], %s1251_s7 }
  0x52   : > { %1705 = dma.done.wait (%p2331_p5), %s175_s8, 2048  }
  0x53   : > { %1707 = vsyncadd (%p2331_p5), %s175_s8, 4294965248  ;;  %p2332_p11 = scmp.eq.s32.totalorder %s1783_s16, 0 }
  0x55   : > { %1709 = dma.done.wait (%p2332_p11), [#allocation6], 3072   ;;  %p2333_p1 = pmov %p2332_p11 }
  0x56   : > { %v1738_v0 = vmov 0   ;;  %v1504_v1 = vld [vmem:[#allocation5 + $0x4] ss:$12 sps:$4 sm:$0xff]   ;;  %v1506_v2 = vld [vmem:[#allocation5] ss:$12 sps:$4 sm:$0xff]   ;;  %v1925_v27 = vld [vmem:[%s1907_s9 + $0x18] sm:$0xff]  ;;  %v266_v49 = vlaneseq }
  0x57   : > { %1711 = vsyncadd (%p2333_p1), [#allocation6], 4294964224  ;;  %441 = vmatprep.mubr.bf16.mxu0 %v1738_v0  ;;  %409 = vmatprep.subr.bf16.mxu0 %v1504_v1  ;;  %v1507_v3 = vld [vmem:[#allocation5 + $0x1c] ss:$12 sps:$4 sm:$0xff]   ;;  %v1509_v4 = vld [vmem:[#allocation5 + $0x18] ss:$12 sps:$4 sm:$0xff]  }
  0x58   : > { %410 = vmatpush1.bf16.msra.mxu0 %v1506_v2  ;;  %v1510_v5 = vld [vmem:[#allocation5 + $0x34] ss:$12 sps:$4 sm:$0xff]   ;;  %v1512_v6 = vld [vmem:[#allocation5 + $0x30] ss:$12 sps:$4 sm:$0xff]   ;;  %v1513_v7 = vld [vmem:[#allocation5 + $0x4c] ss:$12 sps:$4 sm:$0xff]  }
  0x59   : > { %411 = vmatprep.subr.bf16.mxu0 %v1507_v3  ;;  %v208_v8 = vld [vmem:[%s1907_s9] sm:$0xff]  ;;  %v1515_v9 = vld [vmem:[#allocation5 + $0x48] ss:$12 sps:$4 sm:$0xff]   ;;  %v1524_v20 = vld [vmem:[#allocation5 + $0x90] ss:$12 sps:$4 sm:$0xff]   ;;  %v267_v50 = vshrl.u32 %v266_v49, 7 }
  0x5a   : > { %v209_v10 = vld [vmem:[%s1907_s9 + $0x8] sm:$0xff]  ;;  %v1516_v11 = vld [vmem:[#allocation5 + $0x64] ss:$12 sps:$4 sm:$0xff]   ;;  %v1522_v18 = vld [vmem:[#allocation5 + $0x94] ss:$12 sps:$4 sm:$0xff]   ;;  %vm765_vm0 = vcmask 523264  }
  0x5b   : > { %v224_v12 = vpack.c.bf16 %v209_v10, %v208_v8  ;;  %v1518_v13 = vld [vmem:[#allocation5 + $0x60] ss:$12 sps:$4 sm:$0xff]   ;;  %v1519_v14 = vld [vmem:[#allocation5 + $0x7c] ss:$12 sps:$4 sm:$0xff]   ;;  %v1521_v17 = vld [vmem:[#allocation5 + $0x78] ss:$12 sps:$4 sm:$0xff]  }
  0x5c   : > { %412 = vmatpush1.bf16.msra.mxu0 %v1509_v4  ;;  %v1528_v15 = vld [vmem:[#allocation5 + $0x8] ss:$12 sps:$4 sm:$0xff]   ;;  %v1529_v16 = vld [vmem:[#allocation5 + $0x20] ss:$12 sps:$4 sm:$0xff]   ;;  %v1530_v19 = vld [vmem:[#allocation5 + $0x38] ss:$12 sps:$4 sm:$0xff]  }
  0x5d   : > { %413 = vmatprep.subr.bf16.mxu0 %v1510_v5  ;;  %1360 = vmatprep.mubr.bf16.mxu1 %v224_v12  ;;  %v1525_v21 = vld [vmem:[#allocation5 + $0xac] ss:$12 sps:$4 sm:$0xff]   ;;  %v1531_v22 = vld [vmem:[#allocation5 + $0x50] ss:$12 sps:$4 sm:$0xff]   ;;  %v1527_v23 = vld [vmem:[#allocation5 + $0xa8] ss:$12 sps:$4 sm:$0xff]  }
  0x5e   : > { %1344 = vmatprep.subr.bf16.mxu1 %v1528_v15  ;;  %v1532_v24 = vld [vmem:[#allocation5 + $0x68] ss:$12 sps:$4 sm:$0xff]   ;;  %v1533_v25 = vld [vmem:[#allocation5 + $0x80] ss:$12 sps:$4 sm:$0xff]   ;;  %v1534_v28 = vld [vmem:[#allocation5 + $0x98] ss:$12 sps:$4 sm:$0xff]  }
  0x5f   : > { %1345 = vmatpush3.bf16.msra.mxu1 %v1528_v15  ;;  %v1922_v26 = vld [vmem:[%s1907_s9 + $0x10] sm:$0xff]  ;;  %v1931_v31 = vld [vmem:[%s1907_s9 + $0x20] sm:$0xff]  ;;  %v1934_v32 = vld [vmem:[%s1907_s9 + $0x28] sm:$0xff]  ;;  %v268_v51 = vsub.s32 0, %v267_v50  ;;  %v272_v53 = vsub.s32 1, %v267_v50  ;;  %v276_v5 = vsub.s32 2, %v267_v50 }
  0x60   : > { %414 = vmatpush1.bf16.msra.mxu0 %v1512_v6  ;;  %1346 = vmatprep.subr.bf16.mxu1 %v1529_v16  ;;  %v225_v29 = vpack.c.bf16 %v1925_v27, %v1922_v26  ;;  %v1535_v30 = vld [vmem:[#allocation5 + $0xb0] ss:$12 sps:$4 sm:$0xff]   ;;  %v226_v33 = vpack.c.bf16 %v1934_v32, %v1931_v31  ;;  %v1948_v37 = vld [vmem:[%s1907_s9 + $0x40] sm:$0xff]  ;;  %v1951_v38 = vld [vmem:[%s1907_s9 + $0x48] sm:$0xff]  ;;  %s2233_s4 = scalar_lea.vmem [#allocation7], %s1251_s7  ;;  %s1295_s25 = sshll.u32 %s1783_s16, 11 }
  0x61   : > { %415 = vmatprep.subr.bf16.mxu0 %v1513_v7  ;;  %v1940_v34 = vld [vmem:[%s1907_s9 + $0x30] sm:$0xff]  ;;  %v1943_v35 = vld [vmem:[%s1907_s9 + $0x38] sm:$0xff]  ;;  %v228_v39 = vpack.c.bf16 %v1951_v38, %v1948_v37  ;;  %v1963_v42 = vld [vmem:[%s1907_s9 + $0x60] sm:$0xff]  ;;  %s1159_s26 = sshll.u32 %s2233_s4, 4  ;;  %s2266_s11 = scalar_lea.hbm %s2319_s3, %s1295_s25  ;;  %s2268_s26 = int_to_ptr.vmem [resolvable:$true] %s1159_s26 }
  0x62   : > { %v227_v36 = vpack.c.bf16 %v1943_v35, %v1940_v34  ;;  %v1957_v40 = vld [vmem:[%s1907_s9 + $0x50] sm:$0xff]  ;;  %v1960_v41 = vld [vmem:[%s1907_s9 + $0x58] sm:$0xff]  ;;  %v1966_v43 = vld [vmem:[%s1907_s9 + $0x68] sm:$0xff]  ;;  %s1145_s16 = scalar_lea.sflag [#allocation4], %s1901_s6  ;;  %s1660_s27 = scalar_lea.vmem %s2268_s26, 2048 }
  0x63   : > { %1347 = vmatpush3.bf16.msra.mxu1 %v1529_v16  ;;  %v229_v44 = vpack.c.bf16 %v1960_v41, %v1957_v40  ;;  %v230_v45 = vpack.c.bf16 %v1966_v43, %v1963_v42  ;;  %v1974_v46 = vld [vmem:[%s1907_s9 + $0x70] sm:$0xff]  ;;  %v1977_v47 = vld [vmem:[%s1907_s9 + $0x78] sm:$0xff]  ;;  %v264_v52 = vld [vmem:[%s2318_s2] sm:$0x7]  ;;  %p1661_p4 = scmp.ne.s32.totalorder %s2268_s26, %s1660_s27  ;;  %s1739_s28 = smov [#allocation7]  }
  0x64   : > { %416 = vmatpush1.bf16.msra.mxu0 %v1515_v9  ;;  %1348 = vmatprep.subr.bf16.mxu1 %v1530_v19  ;;  %v231_v48 = vpack.c.bf16 %v1977_v47, %v1974_v46  ;;  %v1986_v54 = vrot.slane %v264_v52, %v268_v51  ;;  %v1988_v56 = vrot.slane %v264_v52, %v272_v53  ;;  %s1664_s29 = sshll.u32 %s1739_s28, 4  ;;  %s1665_s29 = int_to_ptr.vmem [resolvable:$false] %s1664_s29 }
  0x65   : > { %417 = vmatprep.subr.bf16.mxu0 %v1516_v11  ;;  %p1662_p6 = pnand %p1661_p4, %p1853_p12  ;;  %s1666_s23 = scalar_lea.vmem %s1665_s29, 4096 }
  0x66   : > { %p1667_p10 = scmp.lt.s32.totalorder %s2268_s26, %s1665_s29  ;;  %p1668_p13 = scmp.lt.s32.totalorder %s1666_s23, %s1660_s27 }
  0x67   : > { %1349 = vmatpush3.bf16.msra.mxu1 %v1530_v19  ;;  %p1663_p8 = pneg %p1662_p6 }
  0x68   : > { %418 = vmatpush1.bf16.msra.mxu0 %v1518_v13  ;;  %1350 = vmatprep.subr.bf16.mxu1 %v1531_v22  ;;  %v2004_v13 = vrot.slane %v264_v52, %v276_v5  ;;  %p1669_p3 = por %p1668_p13, %p1667_p10 }
  0x69   : > { %419 = vmatprep.subr.bf16.mxu0 %v1519_v14 }
  0x6a   : > { %p1670_p7 = pnand %p1669_p3, %p1663_p8 }
  0x6b   : > { %1351 = vmatpush3.bf16.msra.mxu1 %v1531_v22 }
  0x6c   : > { %420 = vmatpush1.bf16.msra.mxu0 %v1521_v17  ;;  %1352 = vmatprep.subr.bf16.mxu1 %v1532_v24 }
  0x6d   : > { %421 = vmatprep.subr.bf16.mxu0 %v1522_v18 }
  0x6f   : > { %1353 = vmatpush3.bf16.msra.mxu1 %v1532_v24 }
  0x70   : > { %422 = vmatpush1.bf16.msra.mxu0 %v1524_v20  ;;  %1354 = vmatprep.subr.bf16.mxu1 %v1533_v25 }
  0x71   : > { %423 = vmatprep.subr.bf16.mxu0 %v1525_v21 }
  0x73   : > { %1355 = vmatpush3.bf16.msra.mxu1 %v1533_v25 }
  0x74   : > { %424 = vmatpush1.bf16.msra.mxu0 %v1527_v23  ;;  %1356 = vmatprep.subr.bf16.mxu1 %v1534_v28 }
  0x77   : > { %442 = vmatmul.mubr.bf16.vlgmr.msra.gmra.mrb[0].mxu0 %v224_v12  ;;  %1357 = vmatpush3.bf16.msra.mxu1 %v1534_v28 }
  0x78   : > { %451 = vmatprep.mubr.bf16.mxu0 %v1738_v0  ;;  %1358 = vmatprep.subr.bf16.mxu1 %v1535_v30 }
  0x7b   : > { %1359 = vmatpush3.bf16.msra.mxu1 %v1535_v30 }
  0x7e   : > { %1361 = vmatmul.mubr.bf16.vlgmr.msra.gmra.mrb[0].mxu1 %v225_v29 }
  0x7f   : > { %452 = vmatmul.mubr.bf16.gmra.mrb[4].mxu0 %v225_v29  ;;  %1364 = vmatprep.mubr.bf16.mxu1 %v226_v33 }
  0x80   : > { %461 = vmatprep.mubr.bf16.mxu0 %v1738_v0 }
  0x86   : > { %1365 = vmatmul.mubr.bf16.gmra.mrb[4].mxu1 %v227_v36 }
  0x87   : > { %462 = vmatmul.mubr.bf16.gmra.mrb[8].mxu0 %v226_v33  ;;  %1368 = vmatprep.mubr.bf16.mxu1 %v228_v39 }
  0x88   : > { %471 = vmatprep.mubr.bf16.mxu0 %v1738_v0 }
  0x8e   : > { %1369 = vmatmul.mubr.bf16.gmra.mrb[8].mxu1 %v229_v44 }
  0x8f   : > { %472 = vmatmul.mubr.bf16.gmra.mrb[12].mxu0 %v227_v36  ;;  %1372 = vmatprep.mubr.bf16.mxu1 %v230_v45 }
  0x90   : > { %481 = vmatprep.mubr.bf16.mxu0 %v1738_v0 }
  0x96   : > { %1373 = vmatmul.mubr.bf16.gmra.mrb[12].mxu1 %v231_v48 }
  0x97   : > { %482 = vmatmul.mubr.bf16.gmra.mrb[16].mxu0 %v228_v39 }
  0x98   : > { %491 = vmatprep.mubr.bf16.mxu0 %v1738_v0 }
  0x9f   : > { %492 = vmatmul.mubr.bf16.gmra.mrb[20].mxu0 %v229_v44 }
  0xa0   : > { %501 = vmatprep.mubr.bf16.mxu0 %v1738_v0 }
  0xa7   : > { %502 = vmatmul.mubr.bf16.gmra.mrb[24].mxu0 %v230_v45 }
  0xa8   : > { %511 = vmatprep.mubr.bf16.mxu0 %v1738_v0 }
  0xaf   : > { %512 = vmatmul.mubr.bf16.gmra.mrb[28].mxu0 %v231_v48 }
 0x14a   : > { %v443_v55 = vpop.f32.mrb[0].mxu0 }
 0x14b   : > { %v445_v57 = vpop.f32.mrb[1].mxu0  ;;  %v444_v59 = vadd.f32 %v443_v55, %v1986_v54 }
 0x14c   : > { %v447_v58 = vpop.f32.mrb[2].mxu0  ;;  %v446_v62 = vadd.f32 %v445_v57, %v1988_v56 }
 0x14d   : > { %v448_v60 = vadd.f32 %v447_v58, %v1986_v54  ;;  %v449_v61 = vpop.f32.mrb[3].mxu0 }
 0x14e   : > { %v450_v63 = vadd.f32 %v449_v61, %v1988_v56 }
 0x14f   : > { %v619_v0 = vpack.c.bf16 %v448_v60, %v444_v59 }
 0x150   : > { %v627_v1 = vpack.c.bf16 %v450_v63, %v446_v62 }
 0x151   : > { %1384 = vmatprep.mubr.bf16.mxu1 %v619_v0  ;;  %v1362_v15 = vpop.f32.mrb[0].mxu1 }
 0x152   : > { %v453_v2 = vpop.f32.mrb[4].mxu0  ;;  %1376 = vmatprep.subr.bf16.mxu1 %v627_v1  ;;  %v565_v17 = vadd.f32 %v1362_v15, %v2004_v13  ;;  %v556_v18 = vpop.f32.mrb[1].mxu1 }
 0x153   : > { %v455_v3 = vpop.f32.mrb[5].mxu0  ;;  %1377 = vmatpush3.bf16.xpose.msra.mxu1 %v627_v1  ;;  %v1995_v6 = vadd.f32 %v453_v2, %v1986_v54  ;;  %v557_v20 = vadd.f32 %v556_v18, %v2004_v13  ;;  %v1363_v21 = vpop.f32.mrb[2].mxu1 }
 0x154   : > { %v457_v4 = vpop.f32.mrb[6].mxu0  ;;  %v456_v9 = vadd.f32 %v455_v3, %v1988_v56  ;;  %v568_v25 = vadd.f32 %v1363_v21, %v2004_v13  ;;  %v559_v28 = vpop.f32.mrb[3].mxu1 }
 0x155   : > { %v1998_v7 = vadd.f32 %v457_v4, %v1986_v54  ;;  %v459_v8 = vpop.f32.mrb[7].mxu0  ;;  %v560_v33 = vadd.f32 %v559_v28, %v2004_v13 }
 0x156   : > { %v460_v10 = vadd.f32 %v459_v8, %v1988_v56  ;;  %v2020_v39 = vpack.c.bf16 %v568_v25, %v565_v17 }
 0x157   : > { %v620_v11 = vpack.c.bf16 %v1998_v7, %v1995_v6  ;;  %v950_v45 = vpack.c.bf16 %v560_v33, %v557_v20 }
 0x158   : > { %v628_v12 = vpack.c.bf16 %v460_v10, %v456_v9 }
 0x159   : > { %v1366_v49 = vpop.f32.mrb[4].mxu1 }
 0x15a   : > { %v463_v14 = vpop.f32.mrb[8].mxu0  ;;  %1378 = vmatprep.subr.bf16.mxu1 %v628_v12  ;;  %v581_v51 = vadd.f32 %v1366_v49, %v2004_v13  ;;  %v572_v52 = vpop.f32.mrb[5].mxu1 }
 0x15b   : > { %v465_v16 = vpop.f32.mrb[9].mxu0  ;;  %1379 = vmatpush3.bf16.xpose.msra.mxu1 %v628_v12  ;;  %v2009_v22 = vadd.f32 %v463_v14, %v1986_v54  ;;  %v573_v55 = vadd.f32 %v572_v52, %v2004_v13  ;;  %v1367_v57 = vpop.f32.mrb[6].mxu1 }
 0x15c   : > { %v467_v19 = vpop.f32.mrb[10].mxu0  ;;  %v466_v29 = vadd.f32 %v465_v16, %v1988_v56  ;;  %v584_v61 = vadd.f32 %v1367_v57, %v2004_v13  ;;  %v575_v62 = vpop.f32.mrb[7].mxu1 }
 0x15d   : > { %v2012_v23 = vadd.f32 %v467_v19, %v1986_v54  ;;  %v469_v24 = vpop.f32.mrb[11].mxu0  ;;  %v576_v1 = vadd.f32 %v575_v62, %v2004_v13 }
 0x15e   : > { %v470_v30 = vadd.f32 %v469_v24, %v1988_v56  ;;  %v2036_v3 = vpack.c.bf16 %v584_v61, %v581_v51 }
 0x15f   : > { %v621_v36 = vpack.c.bf16 %v2012_v23, %v2009_v22  ;;  %v952_v5 = vpack.c.bf16 %v576_v1, %v573_v55 }
 0x160   : > { %v629_v44 = vpack.c.bf16 %v470_v30, %v466_v29 }
 0x161   : > { %v1370_v9 = vpop.f32.mrb[8].mxu1 }
 0x162   : > { %v473_v48 = vpop.f32.mrb[12].mxu0  ;;  %1380 = vmatprep.subr.bf16.mxu1 %v629_v44  ;;  %v597_v12 = vadd.f32 %v1370_v9, %v2004_v13  ;;  %v588_v14 = vpop.f32.mrb[9].mxu1 }
 0x163   : > { %v475_v50 = vpop.f32.mrb[13].mxu0  ;;  %1381 = vmatpush3.bf16.xpose.msra.mxu1 %v629_v44  ;;  %v2025_v58 = vadd.f32 %v473_v48, %v1986_v54  ;;  %v589_v16 = vadd.f32 %v588_v14, %v2004_v13  ;;  %v1371_v17 = vpop.f32.mrb[10].mxu1 }
 0x164   : > { %v477_v53 = vpop.f32.mrb[14].mxu0  ;;  %v476_v63 = vadd.f32 %v475_v50, %v1988_v56  ;;  %v600_v21 = vadd.f32 %v1371_v17, %v2004_v13  ;;  %v591_v22 = vpop.f32.mrb[11].mxu1 }
 0x165   : > { %v2028_v59 = vadd.f32 %v477_v53, %v1986_v54  ;;  %v479_v60 = vpop.f32.mrb[15].mxu0  ;;  %v592_v25 = vadd.f32 %v591_v22, %v2004_v13 }
 0x166   : > { %v480_v0 = vadd.f32 %v479_v60, %v1988_v56  ;;  %v2046_v29 = vpack.c.bf16 %v600_v21, %v597_v12 }
 0x167   : > { %v622_v2 = vpack.c.bf16 %v2028_v59, %v2025_v58  ;;  %v2048_v33 = vpack.c.bf16 %v592_v25, %v589_v16 }
 0x168   : > { %v630_v4 = vpack.c.bf16 %v480_v0, %v476_v63 }
 0x169   : > { %v1374_v48 = vpop.f32.mrb[12].mxu1 }
 0x16a   : > { %v483_v8 = vpop.f32.mrb[16].mxu0  ;;  %1382 = vmatprep.subr.bf16.mxu1 %v630_v4  ;;  %v613_v51 = vadd.f32 %v1374_v48, %v2004_v13  ;;  %v604_v52 = vpop.f32.mrb[13].mxu1 }
 0x16b   : > { %v485_v10 = vpop.f32.mrb[17].mxu0  ;;  %1383 = vmatpush3.bf16.xpose.msra.mxu1 %v630_v4  ;;  %v484_v18 = vadd.f32 %v483_v8, %v1986_v54  ;;  %v605_v55 = vadd.f32 %v604_v52, %v2004_v13  ;;  %v1375_v57 = vpop.f32.mrb[14].mxu1 }
 0x16c   : > { %v487_v15 = vpop.f32.mrb[18].mxu0  ;;  %1408 = vmatprep.subr.bf16.mxu1 %v950_v45  ;;  %v486_v23 = vadd.f32 %v485_v10, %v1988_v56  ;;  %v616_v6 = vadd.f32 %v1375_v57, %v2004_v13  ;;  %v607_v7 = vpop.f32.mrb[15].mxu1 }
 0x16d   : > { %v488_v19 = vadd.f32 %v487_v15, %v1986_v54  ;;  %v489_v20 = vpop.f32.mrb[19].mxu0  ;;  %v608_v60 = vadd.f32 %v607_v7, %v2004_v13 }
 0x16e   : > { %v490_v24 = vadd.f32 %v489_v20, %v1988_v56  ;;  %v2062_v62 = vpack.c.bf16 %v616_v6, %v613_v51 }
 0x16f   : > { %v623_v28 = vpack.c.bf16 %v488_v19, %v484_v18  ;;  %v2064_v0 = vpack.c.bf16 %v608_v60, %v605_v55 }
 0x170   : > { %v631_v30 = vpack.c.bf16 %v490_v24, %v486_v23 }
 0x171   : > { %1400 = vmatprep.mubr.bf16.mxu0 %v623_v28 }
 0x172   : > { %v493_v44 = vpop.f32.mrb[20].mxu0  ;;  %1385 = vmatmul.mubr.bf16.vlgmr.msra.gmra.mrb[16].mxu1 %v620_v11  ;;  %1392 = vmatprep.subr.bf16.mxu0 %v631_v30 }
 0x173   : > { %v494_v49 = vadd.f32 %v493_v44, %v1986_v54  ;;  %v495_v50 = vpop.f32.mrb[21].mxu0  ;;  %1388 = vmatprep.mubr.bf16.mxu1 %v621_v36  ;;  %1393 = vmatpush3.bf16.xpose.msra.mxu0 %v631_v30 }
 0x174   : > { %v497_v53 = vpop.f32.mrb[22].mxu0  ;;  %1409 = vmatpush3.bf16.msra.mxu1 %v950_v45  ;;  %v496_v11 = vadd.f32 %v495_v50, %v1988_v56 }
 0x175   : > { %v498_v58 = vadd.f32 %v497_v53, %v1986_v54  ;;  %v499_v59 = vpop.f32.mrb[23].mxu0  ;;  %1410 = vmatprep.subr.bf16.mxu1 %v2020_v39 }
 0x176   : > { %v500_v36 = vadd.f32 %v499_v59, %v1988_v56 }
 0x177   : > { %v624_v61 = vpack.c.bf16 %v498_v58, %v494_v49 }
 0x178   : > { %v632_v63 = vpack.c.bf16 %v500_v36, %v496_v11  ;;  %1411 = vmatpush3.bf16.msra.mxu1 %v2020_v39 }
 0x179   : > { %1412 = vmatprep.subr.bf16.mxu1 %v952_v5 }
 0x17a   : > { %v503_v45 = vpop.f32.mrb[24].mxu0  ;;  %1389 = vmatmul.mubr.bf16.gmra.mrb[20].mxu1 %v622_v2  ;;  %1394 = vmatprep.subr.bf16.mxu0 %v632_v63 }
 0x17b   : > { %v504_v1 = vadd.f32 %v503_v45, %v1986_v54  ;;  %v505_v4 = vpop.f32.mrb[25].mxu0  ;;  %1395 = vmatpush3.bf16.xpose.msra.mxu0 %v632_v63 }
 0x17c   : > { %v507_v8 = vpop.f32.mrb[26].mxu0  ;;  %1413 = vmatpush3.bf16.msra.mxu1 %v952_v5  ;;  %v506_v10 = vadd.f32 %v505_v4, %v1988_v56 }
 0x17d   : > { %v508_v13 = vadd.f32 %v507_v8, %v1986_v54  ;;  %v509_v9 = vpop.f32.mrb[27].mxu0  ;;  %1414 = vmatprep.subr.bf16.mxu1 %v2036_v3 }
 0x17e   : > { %v510_v12 = vadd.f32 %v509_v9, %v1988_v56 }
 0x17f   : > { %v625_v39 = vpack.c.bf16 %v508_v13, %v504_v1 }
 0x180   : > { %v633_v14 = vpack.c.bf16 %v510_v12, %v506_v10  ;;  %1415 = vmatpush3.bf16.msra.mxu1 %v2036_v3 }
 0x181   : > { %1424 = vmatprep.subr.bf16.mxu1 %v2048_v33 }
 0x182   : > { %v513_v2 = vpop.f32.mrb[28].mxu0  ;;  %1396 = vmatprep.subr.bf16.mxu0 %v633_v14 }
 0x183   : > { %v514_v15 = vadd.f32 %v513_v2, %v1986_v54  ;;  %v515_v5 = vpop.f32.mrb[29].mxu0  ;;  %1397 = vmatpush3.bf16.xpose.msra.mxu0 %v633_v14 }
 0x184   : > { %v517_v16 = vpop.f32.mrb[30].mxu0  ;;  %v516_v19 = vadd.f32 %v515_v5, %v1988_v56 }
 0x185   : > { %v518_v17 = vadd.f32 %v517_v16, %v1986_v54  ;;  %v519_v18 = vpop.f32.mrb[31].mxu0 }
 0x186   : > { %v520_v20 = vadd.f32 %v519_v18, %v1988_v56 }
 0x187   : > { %v626_v21 = vpack.c.bf16 %v518_v17, %v514_v15 }
 0x188   : > { %v634_v22 = vpack.c.bf16 %v520_v20, %v516_v19 }
 0x18a   : > { %1398 = vmatprep.subr.bf16.mxu0 %v634_v22 }
 0x18b   : > { %1399 = vmatpush3.bf16.xpose.msra.mxu0 %v634_v22 }
 0x192   : > { %1401 = vmatmul.mubr.bf16.vlgmr.msra.gmra.mrb[32].mxu0 %v624_v61 }
 0x193   : > { %1404 = vmatprep.mubr.bf16.mxu0 %v625_v39 }
 0x19a   : > { %1405 = vmatmul.mubr.bf16.gmra.mrb[36].mxu0 %v626_v21 }
 0x245   : > { %v1386_v3 = vpop.f32.mrb[16].mxu1 }
 0x246   : > { %v669_v23 = vpop.f32.mrb[17].mxu1  ;;  %v772_v24 = vsel %vm765_vm0, %v1386_v3, -inf }
 0x247   : > { %773 = vmax.xlane.f32.xlu1 %v772_v24  ;;  %v1387_v25 = vpop.f32.mrb[18].mxu1  ;;  %v766_v54 = vsel %vm765_vm0, %v669_v23, -inf }
 0x248   : > { %767 = vmax.xlane.f32.xlu0 %v766_v54  ;;  %v672_v28 = vpop.f32.mrb[19].mxu1  ;;  %v775_v56 = vsel %vm765_vm0, %v1387_v25, -inf }
 0x249   : > { %v769_v30 = vsel %vm765_vm0, %v672_v28, -inf }
 0x24b   : > { %776 = vmax.xlane.f32.xlu1 %v775_v56 }
 0x24c   : > { %770 = vmax.xlane.f32.xlu0 %v769_v30 }
 0x24d   : > { %v2082_v44 = vpop.f32.mrb[20].mxu1 }
 0x24e   : > { %v685_v48 = vpop.f32.mrb[21].mxu1  ;;  %v784_v53 = vsel %vm765_vm0, %v2082_v44, -inf }
 0x24f   : > { %v2084_v49 = vpop.f32.mrb[22].mxu1  ;;  %v778_v50 = vsel %vm765_vm0, %v685_v48, -inf }
 0x250   : > { %779 = vmax.xlane.f32.xlu0 %v778_v50  ;;  %v688_v51 = vpop.f32.mrb[23].mxu1  ;;  %v787_v55 = vsel %vm765_vm0, %v2084_v49, -inf }
 0x251   : > { %v781_v52 = vsel %vm765_vm0, %v688_v51, -inf }
 0x252   : > { %782 = vmax.xlane.f32.xlu1 %v781_v52 }
 0x254   : > { %785 = vmax.xlane.f32.xlu0 %v784_v53 }
 0x256   : > { %788 = vmax.xlane.f32.xlu1 %v787_v55 }
 0x265   : > { %v2092_v57 = vpop.f32.mrb[32].mxu0 }
 0x266   : > { %v2094_v58 = vpop.f32.mrb[33].mxu0  ;;  %v796_v36 = vsel %vm765_vm0, %v2092_v57, -inf }
 0x267   : > { %v2096_v59 = vpop.f32.mrb[34].mxu0  ;;  %v790_v6 = vsel %vm765_vm0, %v2094_v58, -inf }
 0x268   : > { %v2100_v7 = vpop.f32.mrb[35].mxu0  ;;  %791 = vmax.xlane.f32.xlu0 %v790_v6  ;;  %v799_v61 = vsel %vm765_vm0, %v2096_v59, -inf }
 0x269   : > { %v793_v11 = vsel %vm765_vm0, %v2100_v7, -inf }
 0x26a   : > { %794 = vmax.xlane.f32.xlu1 %v793_v11 }
 0x26c   : > { %797 = vmax.xlane.f32.xlu0 %v796_v36 }
 0x26d   : > { %v2106_v60 = vpop.f32.mrb[36].mxu0 }
 0x26e   : > { %v2110_v63 = vpop.f32.mrb[37].mxu0  ;;  %800 = vmax.xlane.f32.xlu1 %v799_v61  ;;  %v808_v13 = vsel %vm765_vm0, %v2106_v60, -inf }
 0x26f   : > { %v2112_v45 = vpop.f32.mrb[38].mxu0  ;;  %v802_v1 = vsel %vm765_vm0, %v2110_v63, -inf }
 0x270   : > { %v2116_v4 = vpop.f32.mrb[39].mxu0  ;;  %803 = vmax.xlane.f32.xlu0 %v802_v1  ;;  %v811_v9 = vsel %vm765_vm0, %v2112_v45, -inf }
 0x271   : > { %v805_v8 = vsel %vm765_vm0, %v2116_v4, -inf }
 0x272   : > { %806 = vmax.xlane.f32.xlu1 %v805_v8 }
 0x274   : > { %809 = vmax.xlane.f32.xlu0 %v808_v13 }
 0x276   : > { %812 = vmax.xlane.f32.xlu1 %v811_v9 }
 0x2d4   : > { %v774_v10 = vpop.xlane.xlu1 %773 }
 0x2d5   : > { %v816_v12 = vsub.f32 %v1386_v3, %v774_v10  ;;  %v768_v39 = vpop.xlane.xlu0 %767 }
 0x2d6   : > { %v814_v14 = vsub.f32 %v669_v23, %v768_v39 }
 0x2d7   : > { %v834_v2 = vmul.f32 1.442695, %v816_v12 }
 0x2d8   : > { %v830_v15 = vmul.f32 1.442695, %v814_v14  ;;  %v777_v5 = vpop.xlane.xlu1 %776 }
 0x2d9   : > { %v817_v16 = vsub.f32 %v1387_v25, %v777_v5  ;;  %v771_v17 = vpop.xlane.xlu0 %770 }
 0x2da   : > { %1536 = vpow2.f32 %v830_v15  ;;  %v815_v18 = vsub.f32 %v672_v28, %v771_v17 }
 0x2db   : > { %1538 = vpow2.f32 %v834_v2  ;;  %v836_v19 = vmul.f32 1.442695, %v817_v16 }
 0x2dc   : > { %v832_v20 = vmul.f32 1.442695, %v815_v18 }
 0x2dd   : > { %v780_v21 = vpop.xlane.xlu0 %779 }
 0x2de   : > { %1540 = vpow2.f32 %v832_v20  ;;  %v818_v22 = vsub.f32 %v685_v48, %v780_v21 }
 0x2df   : > { %v783_v24 = vpop.xlane.xlu1 %782  ;;  %1542 = vpow2.f32 %v836_v19 }
 0x2e0   : > { %v838_v54 = vmul.f32 1.442695, %v818_v22  ;;  %v819_v56 = vsub.f32 %v688_v51, %v783_v24 }
 0x2e1   : > { %v786_v3 = vpop.xlane.xlu0 %785 }
 0x2e2   : > { %1544 = vpow2.f32 %v838_v54  ;;  %v840_v23 = vmul.f32 1.442695, %v819_v56  ;;  %v820_v30 = vsub.f32 %v2082_v44, %v786_v3 }
 0x2e3   : > { %v789_v50 = vpop.xlane.xlu1 %788 }
 0x2e4   : > { %v2125_v25 = vpop.eup %1536  ;;  %1546 = vpow2.f32 %v840_v23  ;;  %v842_v28 = vmul.f32 1.442695, %v820_v30  ;;  %v821_v52 = vsub.f32 %v2084_v49, %v789_v50 }
 0x2e5   : > { %v862_v53 = vsel %vm765_vm0, %v2125_v25, 0.0  ;;  %v2130_v48 = vpop.eup %1538 }
 0x2e6   : > { %1548 = vpow2.f32 %v842_v28  ;;  %v844_v55 = vmul.f32 1.442695, %v821_v52  ;;  %863 = vadd.xlane.f32.xlu0 %v862_v53  ;;  %v868_v44 = vsel %vm765_vm0, %v2130_v48, 0.0 }
 0x2e8   : > { %v2132_v51 = vpop.eup %1540  ;;  %1550 = vpow2.f32 %v844_v55 }
 0x2e9   : > { %v865_v6 = vsel %vm765_vm0, %v2132_v51, 0.0  ;;  %v2138_v11 = vpop.eup %1542 }
 0x2ea   : > { %869 = vadd.xlane.f32.xlu0 %v868_v44  ;;  %866 = vadd.xlane.f32.xlu1 %v865_v6  ;;  %v871_v61 = vsel %vm765_vm0, %v2138_v11, 0.0 }
 0x2ec   : > { %v2140_v49 = vpop.eup %1544 }
 0x2ed   : > { %v874_v36 = vsel %vm765_vm0, %v2140_v49, 0.0 }
 0x2ee   : > { %v2146_v1 = vpop.eup %1546  ;;  %875 = vadd.xlane.f32.xlu0 %v874_v36  ;;  %872 = vadd.xlane.f32.xlu1 %v871_v61 }
 0x2ef   : > { %v877_v9 = vsel %vm765_vm0, %v2146_v1, 0.0 }
 0x2f0   : > { %v2148_v8 = vpop.eup %1548 }
 0x2f1   : > { %v880_v13 = vsel %vm765_vm0, %v2148_v8, 0.0 }
 0x2f2   : > { %v2154_v10 = vpop.eup %1550  ;;  %881 = vadd.xlane.f32.xlu0 %v880_v13  ;;  %878 = vadd.xlane.f32.xlu1 %v877_v9 }
 0x2f3   : > { %v883_v39 = vsel %vm765_vm0, %v2154_v10, 0.0 }
 0x2f5   : > { %v792_v12 = vpop.xlane.xlu0 %791 }
 0x2f6   : > { %v822_v14 = vsub.f32 %v2094_v58, %v792_v12  ;;  %884 = vadd.xlane.f32.xlu1 %v883_v39 }
 0x2f7   : > { %v795_v2 = vpop.xlane.xlu1 %794 }
 0x2f8   : > { %v846_v15 = vmul.f32 1.442695, %v822_v14  ;;  %v823_v5 = vsub.f32 %v2100_v7, %v795_v2 }
 0x2f9   : > { %v798_v16 = vpop.xlane.xlu0 %797 }
 0x2fa   : > { %1552 = vpow2.f32 %v846_v15  ;;  %v848_v17 = vmul.f32 1.442695, %v823_v5  ;;  %v824_v18 = vsub.f32 %v2092_v57, %v798_v16 }
 0x2fb   : > { %v801_v19 = vpop.xlane.xlu1 %800 }
 0x2fc   : > { %1554 = vpow2.f32 %v848_v17  ;;  %v850_v20 = vmul.f32 1.442695, %v824_v18  ;;  %v825_v21 = vsub.f32 %v2096_v59, %v801_v19 }
 0x2fd   : > { %v804_v22 = vpop.xlane.xlu0 %803 }
 0x2fe   : > { %1556 = vpow2.f32 %v850_v20  ;;  %v852_v24 = vmul.f32 1.442695, %v825_v21  ;;  %v826_v58 = vsub.f32 %v2110_v63, %v804_v22 }
 0x2ff   : > { %v807_v54 = vpop.xlane.xlu1 %806 }
 0x300   : > { %1558 = vpow2.f32 %v852_v24  ;;  %v854_v56 = vmul.f32 1.442695, %v826_v58  ;;  %v827_v7 = vsub.f32 %v2116_v4, %v807_v54 }
 0x301   : > { %v810_v3 = vpop.xlane.xlu0 %809 }
 0x302   : > { %1560 = vpow2.f32 %v854_v56  ;;  %v856_v23 = vmul.f32 1.442695, %v827_v7  ;;  %v828_v57 = vsub.f32 %v2106_v60, %v810_v3 }
 0x303   : > { %v813_v30 = vpop.xlane.xlu1 %812 }
 0x304   : > { %v2165_v50 = vpop.eup %1552  ;;  %1562 = vpow2.f32 %v856_v23  ;;  %v858_v59 = vmul.f32 1.442695, %v828_v57  ;;  %v829_v28 = vsub.f32 %v2112_v45, %v813_v30 }
 0x305   : > { %v886_v63 = vsel %vm765_vm0, %v2165_v50, 0.0 }
 0x306   : > { %v2170_v52 = vpop.eup %1554  ;;  %1564 = vpow2.f32 %v858_v59  ;;  %v860_v53 = vmul.f32 1.442695, %v829_v28  ;;  %887 = vadd.xlane.f32.xlu0 %v886_v63 }
 0x307   : > { %v889_v4 = vsel %vm765_vm0, %v2170_v52, 0.0 }
 0x308   : > { %v2174_v55 = vpop.eup %1556  ;;  %1566 = vpow2.f32 %v860_v53  ;;  %890 = vadd.xlane.f32.xlu1 %v889_v4 }
 0x309   : > { %v892_v60 = vsel %vm765_vm0, %v2174_v55, 0.0 }
 0x30a   : > { %v2178_v44 = vpop.eup %1558  ;;  %893 = vadd.xlane.f32.xlu0 %v892_v60 }
 0x30b   : > { %v895_v45 = vsel %vm765_vm0, %v2178_v44, 0.0 }
 0x30c   : > { %v2182_v6 = vpop.eup %1560  ;;  %896 = vadd.xlane.f32.xlu1 %v895_v45 }
 0x30d   : > { %v898_v36 = vsel %vm765_vm0, %v2182_v6, 0.0 }
 0x30e   : > { %v2186_v61 = vpop.eup %1562  ;;  %899 = vadd.xlane.f32.xlu0 %v898_v36 }
 0x30f   : > { %v901_v13 = vsel %vm765_vm0, %v2186_v61, 0.0 }
 0x310   : > { %v2190_v9 = vpop.eup %1564  ;;  %902 = vadd.xlane.f32.xlu1 %v901_v13 }
 0x311   : > { %v904_v12 = vsel %vm765_vm0, %v2190_v9, 0.0 }
 0x312   : > { %v2194_v39 = vpop.eup %1566  ;;  %905 = vadd.xlane.f32.xlu0 %v904_v12 }
 0x313   : > { %v907_v14 = vsel %vm765_vm0, %v2194_v39, 0.0 }
 0x314   : > { %908 = vadd.xlane.f32.xlu1 %v907_v14 }
 0x373   : > { %v864_v2 = vpop.xlane.xlu0 %863 }
 0x374   : > { %1568 = vrcp.f32 %v864_v2 }
 0x377   : > { %v870_v15 = vpop.xlane.xlu0 %869  ;;  %v867_v5 = vpop.xlane.xlu1 %866 }
 0x378   : > { %1570 = vrcp.f32 %v867_v5 }
 0x379   : > { %1572 = vrcp.f32 %v870_v15 }
 0x37b   : > { %v876_v16 = vpop.xlane.xlu0 %875  ;;  %v873_v17 = vpop.xlane.xlu1 %872 }
 0x37c   : > { %1574 = vrcp.f32 %v873_v17 }
 0x37d   : > { %1576 = vrcp.f32 %v876_v16 }
 0x37e   : > { %v1569_v20 = vpop.eup %1568 }
 0x37f   : > { %v882_v18 = vpop.xlane.xlu0 %881  ;;  %v879_v19 = vpop.xlane.xlu1 %878  ;;  %v926_v24 = vmul.f32 %v1569_v20, %v2125_v25 }
 0x380   : > { %1578 = vrcp.f32 %v879_v19 }
 0x381   : > { %1580 = vrcp.f32 %v882_v18 }
 0x382   : > { %v1571_v21 = vpop.eup %1570 }
 0x383   : > { %v885_v22 = vpop.xlane.xlu1 %884  ;;  %v927_v58 = vmul.f32 %v1571_v21, %v2132_v51  ;;  %v1573_v54 = vpop.eup %1572 }
 0x384   : > { %1582 = vrcp.f32 %v885_v22  ;;  %v928_v3 = vmul.f32 %v1573_v54, %v2130_v48  ;;  %v1600_v54 = vld [vmem:[%s1907_s9] sm:$0xff] }
 0x385   : > { %v942_v56 = vpack.c.bf16 %v927_v58, %v926_v24 }
 0x386   : > { %v1575_v7 = vpop.eup %1574 }
 0x387   : > { %v929_v23 = vmul.f32 %v1575_v7, %v2138_v11  ;;  %1416 = vmatprep.mubr.msk.bf16.mxu1 %vm765_vm0, %v942_v56  ;;  %v1577_v57 = vpop.eup %1576 }
 0x388   : > { %v930_v63 = vmul.f32 %v1577_v57, %v2140_v49 }
 0x389   : > { %v943_v30 = vpack.c.bf16 %v929_v23, %v928_v3 }
 0x38a   : > { %v1579_v59 = vpop.eup %1578 }
 0x38b   : > { %v1581_v28 = vpop.eup %1580  ;;  %1417 = vmatmul.mubr.msk.bf16.vlgmr.msra.gmra.mrb[24].mxu1 %vm765_vm0, %v943_v30  ;;  %v931_v25 = vmul.f32 %v1579_v59, %v2146_v1 }
 0x38c   : > { %1425 = vmatpush3.bf16.msra.mxu1 %v2048_v33  ;;  %v932_v11 = vmul.f32 %v1581_v28, %v2148_v8 }
 0x38d   : > { %1426 = vmatprep.subr.bf16.mxu1 %v2046_v29  ;;  %v944_v48 = vpack.c.bf16 %v931_v25, %v930_v63 }
 0x38e   : > { %v1583_v51 = vpop.eup %1582 }
 0x38f   : > { %v933_v53 = vmul.f32 %v1583_v51, %v2154_v10  ;;  %1420 = vmatprep.mubr.msk.bf16.mxu1 %vm765_vm0, %v944_v48 }
 0x390   : > { %1427 = vmatpush3.bf16.msra.mxu1 %v2046_v29 }
 0x391   : > { %v945_v4 = vpack.c.bf16 %v933_v53, %v932_v11  ;;  %1428 = vmatprep.subr.bf16.mxu1 %v2064_v0 }
 0x393   : > { %v888_v49 = vpop.xlane.xlu0 %887  ;;  %1421 = vmatmul.mubr.msk.bf16.gmra.mrb[28].mxu1 %vm765_vm0, %v945_v4 }
 0x394   : > { %1584 = vrcp.f32 %v888_v49  ;;  %1429 = vmatpush3.bf16.msra.mxu1 %v2064_v0 }
 0x395   : > { %v891_v33 = vpop.xlane.xlu1 %890  ;;  %1430 = vmatprep.subr.bf16.mxu1 %v2062_v62 }
 0x396   : > { %1586 = vrcp.f32 %v891_v33 }
 0x397   : > { %v894_v1 = vpop.xlane.xlu0 %893 }
 0x398   : > { %1588 = vrcp.f32 %v894_v1  ;;  %1431 = vmatpush3.bf16.msra.mxu1 %v2062_v62 }
 0x399   : > { %v897_v8 = vpop.xlane.xlu1 %896 }
 0x39a   : > { %1590 = vrcp.f32 %v897_v8 }
 0x39b   : > { %v900_v29 = vpop.xlane.xlu0 %899 }
 0x39c   : > { %1592 = vrcp.f32 %v900_v29 }
 0x39d   : > { %v903_v10 = vpop.xlane.xlu1 %902 }
 0x39e   : > { %v1585_v60 = vpop.eup %1584  ;;  %1594 = vrcp.f32 %v903_v10 }
 0x39f   : > { %v906_v45 = vpop.xlane.xlu0 %905  ;;  %v934_v0 = vmul.f32 %v1585_v60, %v2165_v50 }
 0x3a0   : > { %v1587_v36 = vpop.eup %1586  ;;  %1596 = vrcp.f32 %v906_v45 }
 0x3a1   : > { %v909_v13 = vpop.xlane.xlu1 %908  ;;  %v935_v12 = vmul.f32 %v1587_v36, %v2170_v52 }
 0x3a2   : > { %v1589_v14 = vpop.eup %1588  ;;  %1598 = vrcp.f32 %v909_v13 }
 0x3a3   : > { %v946_v2 = vpack.c.bf16 %v935_v12, %v934_v0  ;;  %v936_v62 = vmul.f32 %v1589_v14, %v2174_v55 }
 0x3a4   : > { %v1591_v15 = vpop.eup %1590 }
 0x3a5   : > { %v937_v5 = vmul.f32 %v1591_v15, %v2178_v44  ;;  %1432 = vmatprep.mubr.msk.bf16.mxu1 %vm765_vm0, %v946_v2 }
 0x3a6   : > { %v1593_v16 = vpop.eup %1592 }
 0x3a7   : > { %v947_v17 = vpack.c.bf16 %v937_v5, %v936_v62  ;;  %v938_v50 = vmul.f32 %v1593_v16, %v2182_v6 }
 0x3a8   : > { %v1595_v18 = vpop.eup %1594 }
 0x3a9   : > { %1433 = vmatmul.mubr.msk.bf16.vlgmr.msra.gmra.mrb[32].mxu1 %vm765_vm0, %v947_v17  ;;  %v939_v52 = vmul.f32 %v1595_v18, %v2186_v61 }
 0x3aa   : > { %v1597_v19 = vpop.eup %1596 }
 0x3ab   : > { %v948_v20 = vpack.c.bf16 %v939_v52, %v938_v50  ;;  %v940_v55 = vmul.f32 %v1597_v19, %v2190_v9 }
 0x3ac   : > { %v1599_v21 = vpop.eup %1598 }
 0x3ad   : > { %1436 = vmatprep.mubr.msk.bf16.mxu1 %vm765_vm0, %v948_v20  ;;  %v941_v44 = vmul.f32 %v1599_v21, %v2194_v39 }
 0x3af   : > { %v949_v22 = vpack.c.bf16 %v941_v44, %v940_v55 }
 0x3b1   : > { %1437 = vmatmul.mubr.msk.bf16.gmra.mrb[36].mxu1 %vm765_vm0, %v949_v22 }
 0x45e   : > { %v1418_v24 = vpop.f32.mrb[24].mxu1 }
 0x45f   : > { %v1114_v58 = vadd.f32 %v1418_v24, %v1922_v26  ;;  %v1004_v6 = vpop.f32.mrb[25].mxu1  ;;  %v1601_v26 = vld [vmem:[%s1907_s9 + $0x8] sm:$0xff] }
 0x460   : > { %v1112_v56 = vadd.f32 %v1600_v54, %v1004_v6  ;;  %v1419_v61 = vpop.f32.mrb[26].mxu1 }
 0x461   : > { %1130 = vst [vmem:[%s2233_s4 + $0x10] sm:$0xff] %v1114_v58  ;;  %v1115_v9 = vadd.f32 %v1419_v61, %v1925_v27  ;;  %v1007_v39 = vpop.f32.mrb[27].mxu1 }
 0x462   : > { %1128 = vst [vmem:[%s2233_s4] sm:$0xff] %v1112_v56  ;;  %v1113_v7 = vadd.f32 %v1601_v26, %v1007_v39 }
 0x463   : > { %1131 = vst [vmem:[%s2233_s4 + $0x18] sm:$0xff] %v1115_v9 }
 0x464   : > { %1129 = vst [vmem:[%s2233_s4 + $0x8] sm:$0xff] %v1113_v7 }
 0x466   : > { %v1422_v3 = vpop.f32.mrb[28].mxu1 }
 0x467   : > { %v1118_v23 = vadd.f32 %v1422_v3, %v1940_v34  ;;  %v1020_v57 = vpop.f32.mrb[29].mxu1 }
 0x468   : > { %v1116_v30 = vadd.f32 %v1020_v57, %v1931_v31  ;;  %v1423_v59 = vpop.f32.mrb[30].mxu1 }
 0x469   : > { %1134 = vst [vmem:[%s2233_s4 + $0x30] sm:$0xff] %v1118_v23  ;;  %v1119_v27 = vadd.f32 %v1423_v59, %v1943_v35  ;;  %v1023_v28 = vpop.f32.mrb[31].mxu1 }
 0x46a   : > { %1132 = vst [vmem:[%s2233_s4 + $0x20] sm:$0xff] %v1116_v30  ;;  %v1117_v63 = vadd.f32 %v1023_v28, %v1934_v32 }
 0x46b   : > { %1135 = vst [vmem:[%s2233_s4 + $0x38] sm:$0xff] %v1119_v27 }
 0x46c   : > { %1133 = vst [vmem:[%s2233_s4 + $0x28] sm:$0xff] %v1117_v63 }
 0x47c   : > { %v1434_v34 = vpop.f32.mrb[32].mxu1 }
 0x47d   : > { %v1122_v25 = vadd.f32 %v1434_v34, %v1957_v40  ;;  %v1081_v51 = vpop.f32.mrb[33].mxu1 }
 0x47e   : > { %v1120_v31 = vadd.f32 %v1081_v51, %v1948_v37  ;;  %v1435_v48 = vpop.f32.mrb[34].mxu1 }
 0x47f   : > { %1138 = vst [vmem:[%s2233_s4 + $0x50] sm:$0xff] %v1122_v25  ;;  %v1123_v35 = vadd.f32 %v1435_v48, %v1960_v41  ;;  %v1084_v11 = vpop.f32.mrb[35].mxu1 }
 0x480   : > { %1136 = vst [vmem:[%s2233_s4 + $0x40] sm:$0xff] %v1120_v31  ;;  %v1121_v32 = vadd.f32 %v1084_v11, %v1951_v38 }
 0x481   : > { %1139 = vst [vmem:[%s2233_s4 + $0x58] sm:$0xff] %v1123_v35 }
 0x482   : > { %1137 = vst [vmem:[%s2233_s4 + $0x48] sm:$0xff] %v1121_v32 }
 0x484   : > { %v1438_v53 = vpop.f32.mrb[36].mxu1 }
 0x485   : > { %v1126_v37 = vadd.f32 %v1438_v53, %v1974_v46  ;;  %v1097_v40 = vpop.f32.mrb[37].mxu1 }
 0x486   : > { %v1124_v4 = vadd.f32 %v1097_v40, %v1963_v42  ;;  %v1439_v41 = vpop.f32.mrb[38].mxu1 }
 0x487   : > { %1142 = vst [vmem:[%s2233_s4 + $0x70] sm:$0xff] %v1126_v37  ;;  %v1127_v49 = vadd.f32 %v1439_v41, %v1977_v47  ;;  %v1100_v33 = vpop.f32.mrb[39].mxu1 }
 0x488   : > { %1140 = vst [vmem:[%s2233_s4 + $0x60] sm:$0xff] %v1124_v4  ;;  %v1125_v38 = vadd.f32 %v1100_v33, %v1966_v43 }
 0x489   : > { %1143 = vst [vmem:[%s2233_s4 + $0x78] sm:$0xff] %v1127_v49 }
 0x48a   : > { %1141 = vst [vmem:[%s2233_s4 + $0x68] sm:$0xff] %v1125_v38 }
 0x48b   : > { %1673 = shalt.err (!%p1670_p7)
}
 0x48c   : > { %s1674_s30 = scalar_lea.hbm %s2266_s11, 2048  ;;  %s1678_s8 = scalar_lea.hbm %s2319_s3, 4096 }
 0x48d   : > { %p1675_p9 = scmp.ne.s32.totalorder %s2266_s11, %s1674_s30  ;;  %p1679_p5 = scmp.lt.u32.totalorder %s2266_s11, %s2319_s3 }
 0x48e   : > { %p1680_p11 = scmp.lt.u32.totalorder %s1678_s8, %s1674_s30  ;;  %p1682_p4 = scmp.lt.u32.totalorder %s1674_s30, %s2266_s11 }
 0x48f   : > { %p1676_p2 = pnand %p1675_p9, %p1853_p12 }
 0x490   : > { %p1681_p1 = por %p1680_p11, %p1679_p5 }
 0x491   : > { %p1677_p0 = pneg %p1676_p2 }
 0x492   : > { %p1683_p6 = por %p1682_p4, %p1681_p1 }
 0x494   : > { %p1684_p8 = pnand %p1683_p6, %p1677_p0 }
 0x496   : > { %1687 = shalt.err (!%p1684_p8)
}
 0x497   : > { %s1740_s20 = smov 128   ;;  %s1741_s4 = smov 8  }
 0x498   : > { %1446 = dma.vmem_to_hbm [thread:$0]  (%p1853_p12), %s2268_s26, 2048, %s2266_s11, %s1145_s16, %s1740_s20, %s1740_s20, %s1741_s4  }
 0x499 PF: > { %s1174_s25 = sand.u32 1, %s1718_s12   ;;  %p2334_p10 = scmp.ne.s32.totalorder %s2324_s19, 0 }
 0x49a   : > { %p2335_p13 = scmp.ge.s32.totalorder %s1730_s15, 2  ;;  %s1175_s5 = scalar_lea.sflag [#allocation4], %s1174_s25 }
 0x49c   : > { %p1457_p3 = pnand %p2335_p13, %p2334_p10 }
 0x49e   : > { %1713 = dma.done.wait (!%p1457_p3), %s1175_s5, 2048  }
 0x49f   : > { %1715 = vsyncadd (!%p1457_p3), %s1175_s5, 4294965248  ;;  %p17_p7 = scmp.ge.s32.totalorder %s1818_s24, 4   ;;  %s2336_s12 = smov %s1722_s13 }
 0x4a0   : > { %s2337_s13 = smov %s1726_s14  ;;  %s2338_s14 = smov %s1849_s17 }
 0x4a1   : > { %s2339_s15 = smov %s1818_s24  ;;  %19 = sbr.rel (!%p17_p7) target bundleno = 6 (0x6), region = 81 }
 0x4a8   :  { %1180 = vsyncpa [#allocation3], 1 }
 0x4a9   :  { %1182 = vsyncpa [#allocation3 + $0x1], 1 }
 0x4aa   :  { %1183 = vsyncpa [#allocation6], 1 }
 0x4ab   :  { %1184 = vsyncpa [#allocation4], 1 }
 0x4ac   :  { %1186 = vsyncpa [#allocation4 + $0x1], 1 }

</bundles_post_ra>
